<compile_context>
chip_gen: v7x
topology: tpu7x:2x2x1
jax: 0.10.0
libtpu: 0.0.40
codegen_flags: <defaults>
</compile_context>

<pallas_src>
import functools

import jax
import jax.numpy as jnp
from jax import lax
from jax.experimental import pallas as pl
from jax.experimental.pallas import tpu as pltpu


def _gelu(x):
    # tanh-approx GELU routes through the EUP (otherwise-idle bundle slot);
    # difference vs. exact erf GELU is ~1e-3, well inside the 2e-2 tolerance.
    return jax.nn.gelu(x, approximate=True)


def _layer_norm(v, gamma, beta, eps):
    # Fused single-pass statistics: var = E[v^2] - E[v]^2 (one sweep, one
    # centered pass instead of two).
    mu = jnp.mean(v, axis=-1, keepdims=True)
    var = jnp.maximum(jnp.mean(v * v, axis=-1, keepdims=True) - mu * mu, 0.0)
    return (v - mu) * lax.rsqrt(var + eps) * gamma + beta


def _mixer_kernel(x_ref, m_ref,
                  g1_ref, b1_ref, g2_ref, b2_ref,
                  w11_ref, w12_ref, w21t_ref, w22t_ref,
                  o_ref, inter_ref, *, eps):
    Bt, T, H = x_ref.shape

    x = x_ref[...]                      # (Bt, T, H) f32
    m = m_ref[...]                      # (Bt, T, 1) f32 — lane-broadcast (free)

    # --- ln_1(inputs * mask) ------------------------------------------------
    n1 = _layer_norm(x * m, g1_ref[...], b1_ref[...], eps)
    n1b = n1.astype(jnp.bfloat16)

    # --- token-mixing MLP over the T axis ------------------------------------
    # (gelu(n1.T @ W11.T) @ W12.T).T == W12 @ gelu(W11 @ n1): transpose folded
    # into weight-on-the-left matmuls; activation stays lane-major in H.
    w11 = w11_ref[...]                  # (Te, T)  bf16
    w12 = w12_ref[...]                  # (T,  Te) bf16
    for b in range(Bt):                 # small static unroll (block_b <= 16)
        h1 = _gelu(jnp.dot(w11, n1b[b], preferred_element_type=jnp.float32))
        tok = jnp.dot(w12, h1.astype(jnp.bfloat16),
                      preferred_element_type=jnp.float32)       # (T, H)
        inter_ref[b] = (x[b] + tok) * m[b]                      # residual + mask

    inter = inter_ref[...]              # (Bt, T, H) f32

    # --- ln_2 + channel-mixing MLP over H ------------------------------------
    n2 = _layer_norm(inter, g2_ref[...], b2_ref[...], eps)
    n2f = n2.reshape(Bt * T, H).astype(jnp.bfloat16)            # fill MXU-M
    h2 = _gelu(jnp.dot(n2f, w21t_ref[...], preferred_element_type=jnp.float32))
    ch = jnp.dot(h2.astype(jnp.bfloat16), w22t_ref[...],
                 preferred_element_type=jnp.float32)            # (Bt*T, H)

    o_ref[...] = (ch.reshape(Bt, T, H) + inter).astype(o_ref.dtype)


def _pick_block_b(B, T, H):
    """Batch elements per grid step: fill sublanes / MXU-M at small (T, H)
    while keeping the f32 activation block (and unroll length) modest."""
    target_rows = 128                 # rows per step for MXU-M / sublane fill
    max_block_bytes = 4 << 20         # f32 activation block cap
    divisors = [d for d in range(1, B + 1) if B % d == 0]
    fitting = [d for d in divisors
               if d <= 16 and d * T * H * 4 <= max_block_bytes] or [1]
    for d in fitting:                 # smallest block reaching target rows
        if d * T >= target_rows:
            return d
    return fitting[-1]                # otherwise the biggest block that fits


def prepare_params(params, compute_dtype=jnp.bfloat16):
    """One-time glue (hoisted out of the per-call path): fold the PyTorch
    (out, in) Linear layout / transposes into the stored weights and cast to
    the MXU-native dtype."""
    H = params["ln1_g"].shape[0]
    return {
        "w11": params["w11"].astype(compute_dtype),      # (Te, T)   left-mul
        "w12": params["w12"].astype(compute_dtype),      # (T,  Te)  left-mul
        "w21t": params["w21"].T.astype(compute_dtype),   # (H,  He)  right-mul
        "w22t": params["w22"].T.astype(compute_dtype),   # (He, H)   right-mul
        "ln1_g": params["ln1_g"].reshape(1, 1, H).astype(jnp.float32),
        "ln1_b": params["ln1_b"].reshape(1, 1, H).astype(jnp.float32),
        "ln2_g": params["ln2_g"].reshape(1, 1, H).astype(jnp.float32),
        "ln2_b": params["ln2_b"].reshape(1, 1, H).astype(jnp.float32),
    }


def mixer_forward(x, mask, prepped, eps=1e-5):
    """Pallas forward. x: (B,T,H) f32, mask: (B,T,1) bool, prepped: prepare_params()."""
    B, T, H = x.shape
    Te = prepped["w11"].shape[0]      # T * expansion_factor
    He = prepped["w21t"].shape[1]     # H * expansion_factor

    # Mask stays (B, T, 1): lane-broadcast inside the kernel, no (B,T,H) copy.
    m = mask.astype(x.dtype)

    block_b = _pick_block_b(B, T, H)
    grid = (B // block_b,)

    blk3 = lambda bs: pl.BlockSpec(bs, lambda i: (i, 0, 0))
    full = lambda shape: pl.BlockSpec(shape, lambda i: (0,) * len(shape))

    # VMEM budget: double-buffered activation blocks + (double-buffered) bf16
    # weights + inter scratch + headroom for f32 temporaries.
    act_blk = block_b * T * H * 4
    msk_blk = block_b * T * 4
    w_bytes = (Te * T + T * Te + H * He + He * H) * 2
    tmp_blk = block_b * T * max(H, He) * 4
    est = 2 * (2 * act_blk + msk_blk) + 2 * w_bytes + act_blk + 6 * tmp_blk
    vmem_limit = int(min(max(est * 3 // 2, 32 << 20), 64 << 20))
    # TODO(synk): on v7x with very large H*expansion (channel weights > ~15 MiB
    # bf16), tile the channel-mix matmuls over He (extra "arbitrary" grid axis
    # + f32 accumulator) and single-buffer the weight operands (pl.Buffered(1))
    # instead of relying on the raised VMEM limit.

    kernel = functools.partial(_mixer_kernel, eps=eps)
    return pl.pallas_call(
        kernel,
        out_shape=jax.ShapeDtypeStruct((B, T, H), x.dtype),
        grid=grid,
        in_specs=[
            blk3((block_b, T, H)),        # x
            blk3((block_b, T, 1)),        # mask (B, T, 1)
            full((1, 1, H)),              # ln1 gamma
            full((1, 1, H)),              # ln1 beta
            full((1, 1, H)),              # ln2 gamma
            full((1, 1, H)),              # ln2 beta
            full((Te, T)),                # w11   (left-multiplied)
            full((T, Te)),                # w12   (left-multiplied)
            full((H, He)),                # w21.T (right-multiplied)
            full((He, H)),                # w22.T (right-multiplied)
        ],
        out_specs=blk3((block_b, T, H)),
        scratch_shapes=[pltpu.VMEM((block_b, T, H), jnp.float32)],
        compiler_params=pltpu.CompilerParams(
            dimension_semantics=("parallel",),
            vmem_limit_bytes=vmem_limit),
    )(x, m,
      prepped["ln1_g"], prepped["ln1_b"], prepped["ln2_g"], prepped["ln2_b"],
      prepped["w11"], prepped["w12"], prepped["w21t"], prepped["w22t"])


def mixer_ref(x, mask, params, eps=1e-5):
    """Plain-JAX (f32, exact GELU) reference matching the PyTorch module."""
    m = mask.astype(x.dtype)

    def ln(v, g, b):
        mu = jnp.mean(v, axis=-1, keepdims=True)
        var = jnp.mean(jnp.square(v - mu), axis=-1, keepdims=True)
        return (v - mu) / jnp.sqrt(var + eps) * g + b

    n1 = ln(x * m, params["ln1_g"], params["ln1_b"])
    t = jnp.swapaxes(n1, -1, -2)
    h1 = jax.nn.gelu(t @ params["w11"].T, approximate=False)
    tok = h1 @ params["w12"].T
    token_mixed = jnp.swapaxes(tok, -1, -2)
    inter = (x + token_mixed) * m
    n2 = ln(inter, params["ln2_g"], params["ln2_b"])
    h2 = jax.nn.gelu(n2 @ params["w21"].T, approximate=False)
    ch = h2 @ params["w22"].T
    return ch + inter


def init_params(key, hidden_size, num_tokens, expansion_factor=1):
    """Deterministic synthetic init. Linear weights in torch (out, in) layout."""
    ks = jax.random.split(key, 4)
    Te = num_tokens * expansion_factor
    He = hidden_size * expansion_factor
    s = 0.1
    return {
        # mlp_1 (token mixing, over num_tokens)
        "w11": s * jax.random.normal(ks[0], (Te, num_tokens), jnp.float32),
        "w12": s * jax.random.normal(ks[1], (num_tokens, Te), jnp.float32),
        # mlp_2 (channel mixing, over hidden_size)
        "w21": s * jax.random.normal(ks[2], (He, hidden_size), jnp.float32),
        "w22": s * jax.random.normal(ks[3], (hidden_size, He), jnp.float32),
        # LayerNorm affine params (PyTorch default init: ones / zeros)
        "ln1_g": jnp.ones((hidden_size,), jnp.float32),
        "ln1_b": jnp.zeros((hidden_size,), jnp.float32),
        "ln2_g": jnp.ones((hidden_size,), jnp.float32),
        "ln2_b": jnp.zeros((hidden_size,), jnp.float32),
    }


if __name__ == "__main__":
    B, T, H = 2, 8, 32          # batch, num_tokens, hidden_size
    EF = 1                      # expansion_factor
    EPS = 1e-5

    key = jax.random.PRNGKey(0)
    kx, km, kp = jax.random.split(key, 3)

    x = jax.random.normal(kx, (B, T, H), jnp.float32)
    mask = jax.random.bernoulli(km, 0.8, (B, T, 1))    # bool mask (B, T, 1)
    params = init_params(kp, H, T, EF)
    prepped = prepare_params(params)                   # one-time weight glue

    fwd = jax.jit(functools.partial(mixer_forward, eps=EPS))
    out = jax.block_until_ready(fwd(x, mask, prepped))

    ref = mixer_ref(x, mask, params, eps=EPS)
    assert out.shape == (B, T, H)
    assert jnp.allclose(out, ref, atol=2e-2, rtol=2e-2), "mismatch vs reference"

    print("KERNEL_OK")
</pallas_src>

<mosaic_0001>
module attributes {stable_mosaic.version = 11 : i64} {
  func.func @_mixer_kernel(%arg0: i32, %arg1: memref<2x8x32xf32, #tpu.memory_space<vmem>>, %arg2: memref<2x8x1xf32, #tpu.memory_space<vmem>>, %arg3: memref<1x1x32xf32, #tpu.memory_space<vmem>>, %arg4: memref<1x1x32xf32, #tpu.memory_space<vmem>>, %arg5: memref<1x1x32xf32, #tpu.memory_space<vmem>>, %arg6: memref<1x1x32xf32, #tpu.memory_space<vmem>>, %arg7: memref<8x8xbf16, #tpu.memory_space<vmem>>, %arg8: memref<8x8xbf16, #tpu.memory_space<vmem>>, %arg9: memref<32x32xbf16, #tpu.memory_space<vmem>>, %arg10: memref<32x32xbf16, #tpu.memory_space<vmem>>, %arg11: memref<2x8x32xf32, #tpu.memory_space<vmem>>, %arg12: memref<2x8x32xf32, #tpu.memory_space<vmem>>) attributes {dimension_semantics = [#tpu.dimension_semantics<parallel>], iteration_bounds = array<i64: 1>, scalar_prefetch = 0 : i64, scratch_operands = 1 : i64, tpu.core_type = #tpu.core_type<tc>, window_params = [{transform_indices = @transform_0, window_bounds = array<i64: 2, 8, 32>}, {transform_indices = @transform_1, window_bounds = array<i64: 2, 8, 1>}, {pipeline_mode = #tpu.pipeline_mode<synchronous>, transform_indices = @transform_2, window_bounds = array<i64: 1, 1, 32>}, {pipeline_mode = #tpu.pipeline_mode<synchronous>, transform_indices = @transform_3, window_bounds = array<i64: 1, 1, 32>}, {pipeline_mode = #tpu.pipeline_mode<synchronous>, transform_indices = @transform_4, window_bounds = array<i64: 1, 1, 32>}, {pipeline_mode = #tpu.pipeline_mode<synchronous>, transform_indices = @transform_5, window_bounds = array<i64: 1, 1, 32>}, {pipeline_mode = #tpu.pipeline_mode<synchronous>, transform_indices = @transform_6, window_bounds = array<i64: 8, 8>}, {pipeline_mode = #tpu.pipeline_mode<synchronous>, transform_indices = @transform_7, window_bounds = array<i64: 8, 8>}, {pipeline_mode = #tpu.pipeline_mode<synchronous>, transform_indices = @transform_8, window_bounds = array<i64: 32, 32>}, {pipeline_mode = #tpu.pipeline_mode<synchronous>, transform_indices = @transform_9, window_bounds = array<i64: 32, 32>}, {transform_indices = @transform_10, window_bounds = array<i64: 2, 8, 32>}]} {
    %c0 = arith.constant 0 : index
    %c0_0 = arith.constant 0 : index
    %c0_1 = arith.constant 0 : index
    %0 = vector.load %arg1[%c0, %c0_0, %c0_1] : memref<2x8x32xf32, #tpu.memory_space<vmem>>, vector<2x8x32xf32>
    %c0_2 = arith.constant 0 : index
    %c0_3 = arith.constant 0 : index
    %c0_4 = arith.constant 0 : index
    %1 = vector.load %arg2[%c0_2, %c0_3, %c0_4] : memref<2x8x1xf32, #tpu.memory_space<vmem>>, vector<2x8x1xf32>
    %2 = vector.broadcast %1 : vector<2x8x1xf32> to vector<2x8x32xf32>
    %3 = arith.mulf %0, %2 : vector<2x8x32xf32>
    %c0_5 = arith.constant 0 : index
    %c0_6 = arith.constant 0 : index
    %c0_7 = arith.constant 0 : index
    %4 = vector.load %arg3[%c0_5, %c0_6, %c0_7] : memref<1x1x32xf32, #tpu.memory_space<vmem>>, vector<1x1x32xf32>
    %c0_8 = arith.constant 0 : index
    %c0_9 = arith.constant 0 : index
    %c0_10 = arith.constant 0 : index
    %5 = vector.load %arg4[%c0_8, %c0_9, %c0_10] : memref<1x1x32xf32, #tpu.memory_space<vmem>>, vector<1x1x32xf32>
    %cst = arith.constant dense<0.000000e+00> : vector<2x8xf32>
    %6 = vector.multi_reduction <add>, %3, %cst [2] : vector<2x8x32xf32> to vector<2x8xf32>
    %7 = vector.shape_cast %6 : vector<2x8xf32> to vector<2x8x1xf32>
    %cst_11 = arith.constant 3.200000e+01 : f32
    %8 = vector.broadcast %cst_11 : f32 to vector<2x8x1xf32>
    %9 = arith.divf %7, %8 : vector<2x8x1xf32>
    %10 = arith.mulf %3, %3 : vector<2x8x32xf32>
    %cst_12 = arith.constant dense<0.000000e+00> : vector<2x8xf32>
    %11 = vector.multi_reduction <add>, %10, %cst_12 [2] : vector<2x8x32xf32> to vector<2x8xf32>
    %12 = vector.shape_cast %11 : vector<2x8xf32> to vector<2x8x1xf32>
    %cst_13 = arith.constant 3.200000e+01 : f32
    %13 = vector.broadcast %cst_13 : f32 to vector<2x8x1xf32>
    %14 = arith.divf %12, %13 : vector<2x8x1xf32>
    %15 = arith.mulf %9, %9 : vector<2x8x1xf32>
    %16 = arith.subf %14, %15 : vector<2x8x1xf32>
    %cst_14 = arith.constant 0.000000e+00 : f32
    %17 = vector.broadcast %cst_14 : f32 to vector<2x8x1xf32>
    %18 = arith.maximumf %16, %17 : vector<2x8x1xf32>
    %19 = vector.broadcast %9 : vector<2x8x1xf32> to vector<2x8x32xf32>
    %20 = arith.subf %3, %19 : vector<2x8x32xf32>
    %cst_15 = arith.constant 9.99999974E-6 : f32
    %21 = vector.broadcast %cst_15 : f32 to vector<2x8x1xf32>
    %22 = arith.addf %18, %21 : vector<2x8x1xf32>
    %23 = math.rsqrt %22 : vector<2x8x1xf32>
    %24 = vector.broadcast %23 : vector<2x8x1xf32> to vector<2x8x32xf32>
    %25 = arith.mulf %20, %24 : vector<2x8x32xf32>
    %26 = vector.broadcast %4 : vector<1x1x32xf32> to vector<2x8x32xf32>
    %27 = arith.mulf %25, %26 : vector<2x8x32xf32>
    %28 = vector.broadcast %5 : vector<1x1x32xf32> to vector<2x8x32xf32>
    %29 = arith.addf %27, %28 : vector<2x8x32xf32>
    %30 = arith.truncf %29 : vector<2x8x32xf32> to vector<2x8x32xbf16>
    %c0_16 = arith.constant 0 : index
    %c0_17 = arith.constant 0 : index
    %31 = vector.load %arg7[%c0_16, %c0_17] : memref<8x8xbf16, #tpu.memory_space<vmem>>, vector<8x8xbf16>
    %c0_18 = arith.constant 0 : index
    %c0_19 = arith.constant 0 : index
    %32 = vector.load %arg8[%c0_18, %c0_19] : memref<8x8xbf16, #tpu.memory_space<vmem>>, vector<8x8xbf16>
    %33 = vector.extract_strided_slice %30 {offsets = [0, 0, 0], sizes = [1, 8, 32], strides = [1, 1, 1]} : vector<2x8x32xbf16> to vector<1x8x32xbf16>
    %34 = vector.shape_cast %33 : vector<1x8x32xbf16> to vector<8x32xbf16>
    %cst_20 = arith.constant dense<0.000000e+00> : vector<8x32xf32>
    %35 = tpu.matmul %31, %34, %cst_20 {dimension_numbers = #tpu.dot_dimension_numbers<[1], [0], [0], [1], [0, 0, 1, 1], [], []>} : vector<8x8xbf16>, vector<8x32xbf16>, vector<8x32xf32> -> vector<8x32xf32>
    %36 = arith.mulf %35, %35 : vector<8x32xf32>
    %37 = arith.mulf %35, %36 : vector<8x32xf32>
    %cst_21 = arith.constant 4.471500e-02 : f32
    %38 = vector.broadcast %cst_21 : f32 to vector<8x32xf32>
    %39 = arith.mulf %38, %37 : vector<8x32xf32>
    %40 = arith.addf %35, %39 : vector<8x32xf32>
    %cst_22 = arith.constant 0.797884583 : f32
    %41 = vector.broadcast %cst_22 : f32 to vector<8x32xf32>
    %42 = arith.mulf %41, %40 : vector<8x32xf32>
    %43 = math.tanh %42 : vector<8x32xf32>
    %cst_23 = arith.constant 1.000000e+00 : f32
    %44 = vector.broadcast %cst_23 : f32 to vector<8x32xf32>
    %45 = arith.addf %44, %43 : vector<8x32xf32>
    %cst_24 = arith.constant 5.000000e-01 : f32
    %46 = vector.broadcast %cst_24 : f32 to vector<8x32xf32>
    %47 = arith.mulf %46, %45 : vector<8x32xf32>
    %48 = arith.mulf %35, %47 : vector<8x32xf32>
    %49 = arith.truncf %48 : vector<8x32xf32> to vector<8x32xbf16>
    %cst_25 = arith.constant dense<0.000000e+00> : vector<8x32xf32>
    %50 = tpu.matmul %32, %49, %cst_25 {dimension_numbers = #tpu.dot_dimension_numbers<[1], [0], [0], [1], [0, 0, 1, 1], [], []>} : vector<8x8xbf16>, vector<8x32xbf16>, vector<8x32xf32> -> vector<8x32xf32>
    %51 = vector.extract_strided_slice %0 {offsets = [0, 0, 0], sizes = [1, 8, 32], strides = [1, 1, 1]} : vector<2x8x32xf32> to vector<1x8x32xf32>
    %52 = vector.shape_cast %51 : vector<1x8x32xf32> to vector<8x32xf32>
    %53 = arith.addf %52, %50 : vector<8x32xf32>
    %54 = vector.extract_strided_slice %1 {offsets = [0, 0, 0], sizes = [1, 8, 1], strides = [1, 1, 1]} : vector<2x8x1xf32> to vector<1x8x1xf32>
    %55 = vector.shape_cast %54 : vector<1x8x1xf32> to vector<8x1xf32>
    %56 = vector.broadcast %55 : vector<8x1xf32> to vector<8x32xf32>
    %57 = arith.mulf %53, %56 : vector<8x32xf32>
    %c0_26 = arith.constant 0 : index
    %c0_27 = arith.constant 0 : index
    %c0_28 = arith.constant 0 : index
    %58 = vector.load %arg12[%c0_26, %c0_27, %c0_28] : memref<2x8x32xf32, #tpu.memory_space<vmem>>, vector<1x8x32xf32>
    %59 = vector.shape_cast %58 : vector<1x8x32xf32> to vector<8x32xf32>
    %60 = vector.shape_cast %57 : vector<8x32xf32> to vector<1x8x32xf32>
    tpu.vector_store %arg12[%c0_26, %c0_27, %c0_28], %60 {strides = array<i32>} : memref<2x8x32xf32, #tpu.memory_space<vmem>>, vector<1x8x32xf32>,
    %61 = vector.extract_strided_slice %30 {offsets = [1, 0, 0], sizes = [1, 8, 32], strides = [1, 1, 1]} : vector<2x8x32xbf16> to vector<1x8x32xbf16>
    %62 = vector.shape_cast %61 : vector<1x8x32xbf16> to vector<8x32xbf16>
    %cst_29 = arith.constant dense<0.000000e+00> : vector<8x32xf32>
    %63 = tpu.matmul %31, %62, %cst_29 {dimension_numbers = #tpu.dot_dimension_numbers<[1], [0], [0], [1], [0, 0, 1, 1], [], []>} : vector<8x8xbf16>, vector<8x32xbf16>, vector<8x32xf32> -> vector<8x32xf32>
    %64 = arith.mulf %63, %63 : vector<8x32xf32>
    %65 = arith.mulf %63, %64 : vector<8x32xf32>
    %cst_30 = arith.constant 4.471500e-02 : f32
    %66 = vector.broadcast %cst_30 : f32 to vector<8x32xf32>
    %67 = arith.mulf %66, %65 : vector<8x32xf32>
    %68 = arith.addf %63, %67 : vector<8x32xf32>
    %cst_31 = arith.constant 0.797884583 : f32
    %69 = vector.broadcast %cst_31 : f32 to vector<8x32xf32>
    %70 = arith.mulf %69, %68 : vector<8x32xf32>
    %71 = math.tanh %70 : vector<8x32xf32>
    %cst_32 = arith.constant 1.000000e+00 : f32
    %72 = vector.broadcast %cst_32 : f32 to vector<8x32xf32>
    %73 = arith.addf %72, %71 : vector<8x32xf32>
    %cst_33 = arith.constant 5.000000e-01 : f32
    %74 = vector.broadcast %cst_33 : f32 to vector<8x32xf32>
    %75 = arith.mulf %74, %73 : vector<8x32xf32>
    %76 = arith.mulf %63, %75 : vector<8x32xf32>
    %77 = arith.truncf %76 : vector<8x32xf32> to vector<8x32xbf16>
    %cst_34 = arith.constant dense<0.000000e+00> : vector<8x32xf32>
    %78 = tpu.matmul %32, %77, %cst_34 {dimension_numbers = #tpu.dot_dimension_numbers<[1], [0], [0], [1], [0, 0, 1, 1], [], []>} : vector<8x8xbf16>, vector<8x32xbf16>, vector<8x32xf32> -> vector<8x32xf32>
    %79 = vector.extract_strided_slice %0 {offsets = [1, 0, 0], sizes = [1, 8, 32], strides = [1, 1, 1]} : vector<2x8x32xf32> to vector<1x8x32xf32>
    %80 = vector.shape_cast %79 : vector<1x8x32xf32> to vector<8x32xf32>
    %81 = arith.addf %80, %78 : vector<8x32xf32>
    %82 = vector.extract_strided_slice %1 {offsets = [1, 0, 0], sizes = [1, 8, 1], strides = [1, 1, 1]} : vector<2x8x1xf32> to vector<1x8x1xf32>
    %83 = vector.shape_cast %82 : vector<1x8x1xf32> to vector<8x1xf32>
    %84 = vector.broadcast %83 : vector<8x1xf32> to vector<8x32xf32>
    %85 = arith.mulf %81, %84 : vector<8x32xf32>
    %c1 = arith.constant 1 : index
    %c0_35 = arith.constant 0 : index
    %c0_36 = arith.constant 0 : index
    %86 = vector.load %arg12[%c1, %c0_35, %c0_36] : memref<2x8x32xf32, #tpu.memory_space<vmem>>, vector<1x8x32xf32>
    %87 = vector.shape_cast %86 : vector<1x8x32xf32> to vector<8x32xf32>
    %88 = vector.shape_cast %85 : vector<8x32xf32> to vector<1x8x32xf32>
    tpu.vector_store %arg12[%c1, %c0_35, %c0_36], %88 {strides = array<i32>} : memref<2x8x32xf32, #tpu.memory_space<vmem>>, vector<1x8x32xf32>,
    %c0_37 = arith.constant 0 : index
    %c0_38 = arith.constant 0 : index
    %c0_39 = arith.constant 0 : index
    %89 = vector.load %arg12[%c0_37, %c0_38, %c0_39] : memref<2x8x32xf32, #tpu.memory_space<vmem>>, vector<2x8x32xf32>
    %c0_40 = arith.constant 0 : index
    %c0_41 = arith.constant 0 : index
    %c0_42 = arith.constant 0 : index
    %90 = vector.load %arg5[%c0_40, %c0_41, %c0_42] : memref<1x1x32xf32, #tpu.memory_space<vmem>>, vector<1x1x32xf32>
    %c0_43 = arith.constant 0 : index
    %c0_44 = arith.constant 0 : index
    %c0_45 = arith.constant 0 : index
    %91 = vector.load %arg6[%c0_43, %c0_44, %c0_45] : memref<1x1x32xf32, #tpu.memory_space<vmem>>, vector<1x1x32xf32>
    %cst_46 = arith.constant dense<0.000000e+00> : vector<2x8xf32>
    %92 = vector.multi_reduction <add>, %89, %cst_46 [2] : vector<2x8x32xf32> to vector<2x8xf32>
    %93 = vector.shape_cast %92 : vector<2x8xf32> to vector<2x8x1xf32>
    %cst_47 = arith.constant 3.200000e+01 : f32
    %94 = vector.broadcast %cst_47 : f32 to vector<2x8x1xf32>
    %95 = arith.divf %93, %94 : vector<2x8x1xf32>
    %96 = arith.mulf %89, %89 : vector<2x8x32xf32>
    %cst_48 = arith.constant dense<0.000000e+00> : vector<2x8xf32>
    %97 = vector.multi_reduction <add>, %96, %cst_48 [2] : vector<2x8x32xf32> to vector<2x8xf32>
    %98 = vector.shape_cast %97 : vector<2x8xf32> to vector<2x8x1xf32>
    %cst_49 = arith.constant 3.200000e+01 : f32
    %99 = vector.broadcast %cst_49 : f32 to vector<2x8x1xf32>
    %100 = arith.divf %98, %99 : vector<2x8x1xf32>
    %101 = arith.mulf %95, %95 : vector<2x8x1xf32>
    %102 = arith.subf %100, %101 : vector<2x8x1xf32>
    %cst_50 = arith.constant 0.000000e+00 : f32
    %103 = vector.broadcast %cst_50 : f32 to vector<2x8x1xf32>
    %104 = arith.maximumf %102, %103 : vector<2x8x1xf32>
    %105 = vector.broadcast %95 : vector<2x8x1xf32> to vector<2x8x32xf32>
    %106 = arith.subf %89, %105 : vector<2x8x32xf32>
    %cst_51 = arith.constant 9.99999974E-6 : f32
    %107 = vector.broadcast %cst_51 : f32 to vector<2x8x1xf32>
    %108 = arith.addf %104, %107 : vector<2x8x1xf32>
    %109 = math.rsqrt %108 : vector<2x8x1xf32>
    %110 = vector.broadcast %109 : vector<2x8x1xf32> to vector<2x8x32xf32>
    %111 = arith.mulf %106, %110 : vector<2x8x32xf32>
    %112 = vector.broadcast %90 : vector<1x1x32xf32> to vector<2x8x32xf32>
    %113 = arith.mulf %111, %112 : vector<2x8x32xf32>
    %114 = vector.broadcast %91 : vector<1x1x32xf32> to vector<2x8x32xf32>
    %115 = arith.addf %113, %114 : vector<2x8x32xf32>
    %116 = vector.shape_cast %115 : vector<2x8x32xf32> to vector<16x32xf32>
    %117 = arith.truncf %116 : vector<16x32xf32> to vector<16x32xbf16>
    %c0_52 = arith.constant 0 : index
    %c0_53 = arith.constant 0 : index
    %118 = vector.load %arg9[%c0_52, %c0_53] : memref<32x32xbf16, #tpu.memory_space<vmem>>, vector<32x32xbf16>
    %cst_54 = arith.constant dense<0.000000e+00> : vector<16x32xf32>
    %119 = tpu.matmul %117, %118, %cst_54 {dimension_numbers = #tpu.dot_dimension_numbers<[1], [0], [0], [1], [0, 0, 1, 1], [], []>} : vector<16x32xbf16>, vector<32x32xbf16>, vector<16x32xf32> -> vector<16x32xf32>
    %120 = arith.mulf %119, %119 : vector<16x32xf32>
    %121 = arith.mulf %119, %120 : vector<16x32xf32>
    %cst_55 = arith.constant 4.471500e-02 : f32
    %122 = vector.broadcast %cst_55 : f32 to vector<16x32xf32>
    %123 = arith.mulf %122, %121 : vector<16x32xf32>
    %124 = arith.addf %119, %123 : vector<16x32xf32>
    %cst_56 = arith.constant 0.797884583 : f32
    %125 = vector.broadcast %cst_56 : f32 to vector<16x32xf32>
    %126 = arith.mulf %125, %124 : vector<16x32xf32>
    %127 = math.tanh %126 : vector<16x32xf32>
    %cst_57 = arith.constant 1.000000e+00 : f32
    %128 = vector.broadcast %cst_57 : f32 to vector<16x32xf32>
    %129 = arith.addf %128, %127 : vector<16x32xf32>
    %cst_58 = arith.constant 5.000000e-01 : f32
    %130 = vector.broadcast %cst_58 : f32 to vector<16x32xf32>
    %131 = arith.mulf %130, %129 : vector<16x32xf32>
    %132 = arith.mulf %119, %131 : vector<16x32xf32>
    %133 = arith.truncf %132 : vector<16x32xf32> to vector<16x32xbf16>
    %c0_59 = arith.constant 0 : index
    %c0_60 = arith.constant 0 : index
    %134 = vector.load %arg10[%c0_59, %c0_60] : memref<32x32xbf16, #tpu.memory_space<vmem>>, vector<32x32xbf16>
    %cst_61 = arith.constant dense<0.000000e+00> : vector<16x32xf32>
    %135 = tpu.matmul %133, %134, %cst_61 {dimension_numbers = #tpu.dot_dimension_numbers<[1], [0], [0], [1], [0, 0, 1, 1], [], []>} : vector<16x32xbf16>, vector<32x32xbf16>, vector<16x32xf32> -> vector<16x32xf32>
    %136 = vector.shape_cast %135 : vector<16x32xf32> to vector<2x8x32xf32>
    %137 = arith.addf %136, %89 : vector<2x8x32xf32>
    %c0_62 = arith.constant 0 : index
    %c0_63 = arith.constant 0 : index
    %c0_64 = arith.constant 0 : index
    %138 = vector.load %arg11[%c0_62, %c0_63, %c0_64] : memref<2x8x32xf32, #tpu.memory_space<vmem>>, vector<2x8x32xf32>
    tpu.vector_store %arg11[%c0_62, %c0_63, %c0_64], %137 {strides = array<i32>} : memref<2x8x32xf32, #tpu.memory_space<vmem>>, vector<2x8x32xf32>,
    return
  }
  func.func @transform_0(%arg0: i32) -> (i32, i32, i32) {
    %c0_i32 = arith.constant 0 : i32
    %c0_i32_0 = arith.constant 0 : i32
    %c0_i32_1 = arith.constant 0 : i32
    return %arg0, %c0_i32, %c0_i32_0 : i32, i32, i32
  }
  func.func @transform_1(%arg0: i32) -> (i32, i32, i32) {
    %c0_i32 = arith.constant 0 : i32
    %c0_i32_0 = arith.constant 0 : i32
    %c0_i32_1 = arith.constant 0 : i32
    return %arg0, %c0_i32, %c0_i32_0 : i32, i32, i32
  }
  func.func @transform_2(%arg0: i32) -> (i32, i32, i32) {
    %c0_i32 = arith.constant 0 : i32
    %c0_i32_0 = arith.constant 0 : i32
    %c0_i32_1 = arith.constant 0 : i32
    %c0_i32_2 = arith.constant 0 : i32
    return %c0_i32, %c0_i32_0, %c0_i32_1 : i32, i32, i32
  }
  func.func @transform_3(%arg0: i32) -> (i32, i32, i32) {
    %c0_i32 = arith.constant 0 : i32
    %c0_i32_0 = arith.constant 0 : i32
    %c0_i32_1 = arith.constant 0 : i32
    %c0_i32_2 = arith.constant 0 : i32
    return %c0_i32, %c0_i32_0, %c0_i32_1 : i32, i32, i32
  }
  func.func @transform_4(%arg0: i32) -> (i32, i32, i32) {
    %c0_i32 = arith.constant 0 : i32
    %c0_i32_0 = arith.constant 0 : i32
    %c0_i32_1 = arith.constant 0 : i32
    %c0_i32_2 = arith.constant 0 : i32
    return %c0_i32, %c0_i32_0, %c0_i32_1 : i32, i32, i32
  }
  func.func @transform_5(%arg0: i32) -> (i32, i32, i32) {
    %c0_i32 = arith.constant 0 : i32
    %c0_i32_0 = arith.constant 0 : i32
    %c0_i32_1 = arith.constant 0 : i32
    %c0_i32_2 = arith.constant 0 : i32
    return %c0_i32, %c0_i32_0, %c0_i32_1 : i32, i32, i32
  }
  func.func @transform_6(%arg0: i32) -> (i32, i32) {
    %c0_i32 = arith.constant 0 : i32
    %c0_i32_0 = arith.constant 0 : i32
    %c0_i32_1 = arith.constant 0 : i32
    return %c0_i32, %c0_i32_0 : i32, i32
  }
  func.func @transform_7(%arg0: i32) -> (i32, i32) {
    %c0_i32 = arith.constant 0 : i32
    %c0_i32_0 = arith.constant 0 : i32
    %c0_i32_1 = arith.constant 0 : i32
    return %c0_i32, %c0_i32_0 : i32, i32
  }
  func.func @transform_8(%arg0: i32) -> (i32, i32) {
    %c0_i32 = arith.constant 0 : i32
    %c0_i32_0 = arith.constant 0 : i32
    %c0_i32_1 = arith.constant 0 : i32
    return %c0_i32, %c0_i32_0 : i32, i32
  }
  func.func @transform_9(%arg0: i32) -> (i32, i32) {
    %c0_i32 = arith.constant 0 : i32
    %c0_i32_0 = arith.constant 0 : i32
    %c0_i32_1 = arith.constant 0 : i32
    return %c0_i32, %c0_i32_0 : i32, i32
  }
  func.func @transform_10(%arg0: i32) -> (i32, i32, i32) {
    %c0_i32 = arith.constant 0 : i32
    %c0_i32_0 = arith.constant 0 : i32
    %c0_i32_1 = arith.constant 0 : i32
    return %arg0, %c0_i32, %c0_i32_0 : i32, i32, i32
  }
}

</mosaic_0001>

<bundles_post_ra>
// kernel: mixer_forward.1
= control target key start
LH: loop header
LB: loop body
LE: loop exit
PB: predicated region body
PF: predicated region fallthrough
CT: control target
= control target key end

     0   :  { %15 = vsyncpa [#allocation4], 0  ;;  %s1114_s0 = inlined_call_operand.vmem [shape: f32[2,8,32], index: 0, kind: input, shape index: {}]   ;;  %s1115_s1 = inlined_call_operand.vmem [shape: f32[2,8,1], index: 1, kind: input, shape index: {}]   ;;  %s1116_s2 = inlined_call_operand.hbm [shape: f32[1,1,32], index: 2, kind: input, shape index: {}]   ;;  %s1117_s3 = inlined_call_operand.hbm [shape: f32[1,1,32], index: 3, kind: input, shape index: {}]   ;;  %s1118_s4 = inlined_call_operand.hbm [shape: f32[1,1,32], index: 4, kind: input, shape index: {}]   ;;  %s1119_s5 = inlined_call_operand.hbm [shape: f32[1,1,32], index: 5, kind: input, shape index: {}]   ;;  %s1120_s6 = inlined_call_operand.hbm [shape: bf16[8,8], index: 6, kind: input, shape index: {}]   ;;  %s1121_s7 = inlined_call_operand.hbm [shape: bf16[8,8], index: 7, kind: input, shape index: {}]   ;;  %s1122_s8 = inlined_call_operand.vmem [shape: bf16[32,32], index: 8, kind: input, shape index: {}]   ;;  %s1123_s9 = inlined_call_operand.vmem [shape: bf16[32,32], index: 9, kind: input, shape index: {}]   ;;  %s1124_s10 = inlined_call_operand.hbm [shape: f32[2,8,32], index: 10, kind: output, shape index: {}]  }
   0x1   :  { %16 = vsyncpa [#allocation7], 0 }
   0x2   :  { %17 = vsyncpa [#allocation10], 0 }
   0x3   :  { %18 = vsyncpa [#allocation13], 0 }
   0x4   :  { %19 = vsyncpa [#allocation5], 0  ;;  %s867_s13 = smov [#allocation6]   ;;  %s868_s15 = smov [#allocation9]  }
   0x5   :  { %s40_s14 = sshll.u32 %s867_s13, 4  ;;  %s60_s16 = sshll.u32 %s868_s15, 4  ;;  %s41_s14 = int_to_ptr.vmem [resolvable:$true] %s40_s14  ;;  %s61_s16 = int_to_ptr.vmem [resolvable:$true] %s60_s16 }
   0x6   :  { %s703_s19 = scalar_lea.hbm %s1117_s3, 16 }
   0x7   :  { %p704_p0 = scmp.ne.s32.totalorder %s1117_s3, %s703_s19  ;;  %p707_p1 = scmp.lt.u32.totalorder %s703_s19, %s1117_s3 }
   0x9   :  { %p709_p2 = pnand %p707_p1, %p704_p0 }
   0xb   :  { %712 = shalt.err (!%p709_p2)
}
   0xc   :  { %s713_s24 = scalar_lea.vmem %s41_s14, 16  ;;  %s717_s25 = scalar_lea.vmem %s41_s14, 32 }
   0xd   :  { %p714_p3 = scmp.ne.s32.totalorder %s41_s14, %s713_s24  ;;  %p718_p4 = scmp.lt.s32.totalorder %s41_s14, %s41_s14 }
   0xe   :  { %p719_p5 = scmp.lt.s32.totalorder %s717_s25, %s713_s24 }
  0x10   :  { %p720_p6 = por %p719_p5, %p718_p4 }
  0x12   :  { %p721_p7 = pnand %p720_p6, %p714_p3 }
  0x14   :  { %724 = shalt.err (!%p721_p7)
}
  0x15   :  { %43 = dma.hbm_to_vmem [thread:$0]  %s1117_s3, 16, %s41_s14, [#allocation7]  }
  0x16   :  { %s725_s30 = scalar_lea.hbm %s1119_s5, 16 }
  0x17   :  { %p726_p8 = scmp.ne.s32.totalorder %s1119_s5, %s725_s30  ;;  %p729_p9 = scmp.lt.u32.totalorder %s725_s30, %s1119_s5 }
  0x19   :  { %p731_p10 = pnand %p729_p9, %p726_p8 }
  0x1b   :  { %734 = shalt.err (!%p731_p10)
}
  0x1c   :  { %s735_s17 = scalar_lea.vmem %s61_s16, 16  ;;  %s739_s18 = scalar_lea.vmem %s61_s16, 32 }
  0x1d   :  { %p736_p11 = scmp.ne.s32.totalorder %s61_s16, %s735_s17  ;;  %p740_p12 = scmp.lt.s32.totalorder %s61_s16, %s61_s16 }
  0x1e   :  { %p741_p13 = scmp.lt.s32.totalorder %s739_s18, %s735_s17 }
  0x20   :  { %p742_p0 = por %p741_p13, %p740_p12 }
  0x22   :  { %p743_p1 = pnand %p742_p0, %p736_p11 }
  0x24   :  { %746 = shalt.err (!%p743_p1)
}
  0x25   :  { %63 = dma.hbm_to_vmem [thread:$0]  %s1119_s5, 16, %s61_s16, [#allocation10]  }
  0x26   :  { %s869_s19 = smov [#allocation3]   ;;  %s870_s21 = smov [#allocation8]  }
  0x27   :  { %s30_s20 = sshll.u32 %s869_s19, 4  ;;  %s50_s22 = sshll.u32 %s870_s21, 4  ;;  %s31_s20 = int_to_ptr.vmem [resolvable:$true] %s30_s20  ;;  %s51_s22 = int_to_ptr.vmem [resolvable:$true] %s50_s22 }
  0x28   :  { %s747_s25 = scalar_lea.hbm %s1116_s2, 16 }
  0x29   :  { %p748_p2 = scmp.ne.s32.totalorder %s1116_s2, %s747_s25  ;;  %p751_p3 = scmp.lt.u32.totalorder %s747_s25, %s1116_s2 }
  0x2b   :  { %p753_p4 = pnand %p751_p3, %p748_p2 }
  0x2d   :  { %756 = shalt.err (!%p753_p4)
}
  0x2e   :  { %s757_s5 = scalar_lea.vmem %s31_s20, 16  ;;  %s761_s16 = scalar_lea.vmem %s31_s20, 32 }
  0x2f   :  { %p758_p5 = scmp.ne.s32.totalorder %s31_s20, %s757_s5  ;;  %p762_p6 = scmp.lt.s32.totalorder %s31_s20, %s31_s20 }
  0x30   :  { %p763_p7 = scmp.lt.s32.totalorder %s761_s16, %s757_s5 }
  0x32   :  { %p764_p8 = por %p763_p7, %p762_p6 }
  0x34   :  { %p765_p9 = pnand %p764_p8, %p758_p5 }
  0x36   :  { %768 = shalt.err (!%p765_p9)
}
  0x37   :  { %33 = dma.hbm_to_vmem [thread:$0]  %s1116_s2, 16, %s31_s20, [#allocation4]  }
  0x38   :  { %s769_s15 = scalar_lea.hbm %s1118_s4, 16 }
  0x39   :  { %p770_p10 = scmp.ne.s32.totalorder %s1118_s4, %s769_s15  ;;  %p773_p11 = scmp.lt.u32.totalorder %s769_s15, %s1118_s4 }
  0x3b   :  { %p775_p12 = pnand %p773_p11, %p770_p10 }
  0x3d   :  { %778 = shalt.err (!%p775_p12)
}
  0x3e   :  { %s779_s19 = scalar_lea.vmem %s51_s22, 16  ;;  %s783_s21 = scalar_lea.vmem %s51_s22, 32 }
  0x3f   :  { %p780_p13 = scmp.ne.s32.totalorder %s51_s22, %s779_s19  ;;  %p784_p0 = scmp.lt.s32.totalorder %s51_s22, %s51_s22 }
  0x40   :  { %p785_p1 = scmp.lt.s32.totalorder %s783_s21, %s779_s19 }
  0x42   :  { %p786_p2 = por %p785_p1, %p784_p0 }
  0x44   :  { %p787_p3 = pnand %p786_p2, %p780_p13 }
  0x46   :  { %790 = shalt.err (!%p787_p3)
}
  0x47   :  { %53 = dma.hbm_to_vmem [thread:$0]  %s1118_s4, 16, %s51_s22, [#allocation7]  }
  0x48   :  { %s871_s23 = smov [#allocation11]   ;;  %s872_s25 = smov [#allocation12]  }
  0x49   :  { %s70_s24 = sshll.u32 %s871_s23, 4  ;;  %s80_s26 = sshll.u32 %s872_s25, 4  ;;  %s71_s24 = int_to_ptr.vmem [resolvable:$true] %s70_s24  ;;  %s81_s26 = int_to_ptr.vmem [resolvable:$true] %s80_s26 }
  0x4a   :  { %s791_s29 = scalar_lea.hbm %s1120_s6, 64 }
  0x4b   :  { %p792_p4 = scmp.ne.s32.totalorder %s1120_s6, %s791_s29  ;;  %p795_p5 = scmp.lt.u32.totalorder %s791_s29, %s1120_s6 }
  0x4d   :  { %p797_p6 = pnand %p795_p5, %p792_p4 }
  0x4f   :  { %800 = shalt.err (!%p797_p6)
}
  0x50   :  { %s801_s4 = scalar_lea.vmem %s71_s24, 64  ;;  %p806_p8 = scmp.lt.s32.totalorder %s71_s24, %s71_s24 }
  0x51   :  { %p802_p7 = scmp.ne.s32.totalorder %s71_s24, %s801_s4  ;;  %p807_p9 = scmp.lt.s32.totalorder %s801_s4, %s801_s4 }
  0x53   :  { %p808_p10 = por %p807_p9, %p806_p8 }
  0x55   :  { %p809_p11 = pnand %p808_p10, %p802_p7 }
  0x57   :  { %812 = shalt.err (!%p809_p11)
}
  0x58   :  { %73 = dma.hbm_to_vmem [thread:$0]  %s1120_s6, 64, %s71_s24, [#allocation10]  }
  0x59   :  { %s813_s17 = scalar_lea.hbm %s1121_s7, 64 }
  0x5a   :  { %p814_p12 = scmp.ne.s32.totalorder %s1121_s7, %s813_s17  ;;  %p817_p13 = scmp.lt.u32.totalorder %s813_s17, %s1121_s7 }
  0x5c   :  { %p819_p0 = pnand %p817_p13, %p814_p12 }
  0x5e   :  { %822 = shalt.err (!%p819_p0)
}
  0x5f   :  { %s823_s21 = scalar_lea.vmem %s81_s26, 64  ;;  %p828_p2 = scmp.lt.s32.totalorder %s81_s26, %s81_s26 }
  0x60   :  { %p824_p1 = scmp.ne.s32.totalorder %s81_s26, %s823_s21  ;;  %p829_p3 = scmp.lt.s32.totalorder %s823_s21, %s823_s21 }
  0x62   :  { %p830_p4 = por %p829_p3, %p828_p2 }
  0x64   :  { %p831_p5 = pnand %p830_p4, %p824_p1 }
  0x66   :  { %834 = shalt.err (!%p831_p5)
}
  0x67   :  { %83 = dma.hbm_to_vmem [thread:$0]  %s1121_s7, 64, %s81_s26, [#allocation13]  }
  0x68   :  { %857 = dma.done.wait [#allocation4], 16  }
  0x69   :  { %858 = vsyncadd [#allocation4], 4294967280 }
  0x6a   :  { %859 = dma.done.wait [#allocation7], 32  }
  0x6b   :  { %860 = vsyncadd [#allocation7], 4294967264 }
  0x6c   :  { %861 = dma.done.wait [#allocation10], 80  }
  0x6d   :  { %862 = vsyncadd [#allocation10], 4294967216 }
  0x6e   :  { %863 = dma.done.wait [#allocation13], 64  }
  0x6f   :  { %864 = vsyncadd [#allocation13], 4294967232  ;;  %v873_v0 = vmov 0   ;;  %v109_v1 = vld [vmem:[%s1115_s1] sm:$0xff]  ;;  %v110_v2 = vld [vmem:[%s1115_s1 + $0x8] sm:$0xff]  ;;  %vm125_vm0 = vcmask 261120  }
  0x70   :  { %682 = vset.pattern.permute.xlu0 %v873_v0  ;;  %v1015_v3 = vld [vmem:[%s1114_s0] sm:$0xff]  ;;  %v1024_v6 = vld [vmem:[%s1114_s0 + $0x8] sm:$0xff]  ;;  %v874_v15 = vmov 0.0   ;;  %vm875_vm1 = vmmov 0   ;;  %v602_v34 = vld [vmem:[#allocation3] ss:$0 sm:$0xff] }
  0x71   :  { %113 = vperm.xlu0 %682, %v109_v1   ;;  %630 = vmatprep.subr.bf16.mxu0 %v874_v15  ;;  %v603_v36 = vld [vmem:[#allocation6] ss:$0 sm:$0xff]  ;;  %vm183_vm2 = vcmask 1043456   ;;  %v177_v46 = vld [vmem:[#allocation11] sm:$0xf]  ;;  %vm179_vm3 = vcmask 64512  }
  0x72   :  { %636 = vmatprep.subr.bf16.mxu1 %v874_v15  ;;  %632 = vmatprep.mubr.msk.bf16.mxu0 %vm875_vm1, %v874_v15 }
  0x73   :  { %638 = vmatprep.mubr.msk.bf16.mxu1 %vm875_vm1, %v874_v15 }
  0x75   :  { %118 = vperm.xlu0 %682, %v110_v2  }
  0xf0   :  { %v1017_v4 = vpop.permute.xlu0 %113 }
  0xf1   :  { %v121_v5 = vmul.f32 %v1017_v4, %v1015_v3 }
  0xf3   :  { %v126_v7 = vsel %vm125_vm0, %v121_v5, 0.0  ;;  %v135_v8 = vmul.f32 %v121_v5, %v121_v5 }
  0xf4   :  { %v1027_v9 = vpop.permute.xlu0 %118  ;;  %127 = vadd.xlane.f32.xlu1 %v126_v7 }
  0xf5   :  { %v122_v10 = vmul.f32 %v1027_v9, %v1024_v6  ;;  %v137_v12 = vsel %vm125_vm0, %v135_v8, 0.0 }
  0xf7   :  { %v129_v11 = vsel %vm125_vm0, %v122_v10, 0.0  ;;  %v136_v13 = vmul.f32 %v122_v10, %v122_v10 }
  0xf8   :  { %130 = vadd.xlane.f32.xlu0 %v129_v11  ;;  %138 = vadd.xlane.f32.xlu1 %v137_v12 }
  0xf9   :  { %v140_v14 = vsel %vm125_vm0, %v136_v13, 0.0 }
  0xfc   :  { %141 = vadd.xlane.f32.xlu1 %v140_v14 }
 0x181   :  { %v128_v16 = vpop.xlane.xlu1 %127 }
 0x182   :  { %v133_v17 = vmul.f32 0.03125, %v128_v16  ;;  %v178_v16 = vld [vmem:[#allocation12] sm:$0xf] }
 0x184   :  { %v145_v20 = vmul.f32 %v133_v17, %v133_v17  ;;  %v151_v32 = vsub.f32 %v121_v5, %v133_v17 }
 0x185   :  { %v131_v18 = vpop.xlane.xlu0 %130  ;;  %v139_v19 = vpop.xlane.xlu1 %138 }
 0x186   :  { %v134_v21 = vmul.f32 0.03125, %v131_v18  ;;  %v143_v22 = vmul.f32 0.03125, %v139_v19 }
 0x188   :  { %v147_v23 = vsub.f32 %v143_v22, %v145_v20  ;;  %v146_v25 = vmul.f32 %v134_v21, %v134_v21  ;;  %v152_v37 = vsub.f32 %v122_v10, %v134_v21 }
 0x189   :  { %v142_v24 = vpop.xlane.xlu1 %141 }
 0x18a   :  { %v149_v26 = vmax.f32 %v147_v23, 0.0  ;;  %v144_v27 = vmul.f32 0.03125, %v142_v24 }
 0x18c   :  { %v153_v28 = vadd.f32 1e-05, %v149_v26  ;;  %v148_v29 = vsub.f32 %v144_v27, %v146_v25 }
 0x18e   :  { %687 = vrsqrt.f32 %v153_v28  ;;  %v150_v30 = vmax.f32 %v148_v29, 0.0 }
 0x190   :  { %v154_v31 = vadd.f32 1e-05, %v150_v30 }
 0x192   :  { %689 = vrsqrt.f32 %v154_v31 }
 0x198   :  { %v688_v33 = vpop.eup %687 }
 0x199   :  { %v157_v35 = vmul.f32 %v688_v33, %v151_v32 }
 0x19b   :  { %v165_v38 = vmul.f32 %v602_v34, %v157_v35 }
 0x19c   :  { %v690_v39 = vpop.eup %689 }
 0x19d   :  { %v158_v40 = vmul.f32 %v690_v39, %v152_v37  ;;  %v173_v41 = vadd.f32 %v603_v36, %v165_v38  ;;  %v683_v37 = vld [vmem:[%s1122_s8] sm:$0xff]   ;;  %v684_v38 = vld [vmem:[%s1122_s8 + $0x8] sm:$0xff]  }
 0x19f   :  { %v166_v42 = vmul.f32 %v602_v34, %v158_v40  ;;  %v175_v43 = vpack.c.bf16 %v173_v41, %v173_v41 }
 0x1a1   :  { %v174_v44 = vadd.f32 %v603_v36, %v166_v42  ;;  %v185_v45 = vsel %vm183_vm2, %v175_v43, 0 }
 0x1a2   :  { %631 = vmatpush3.bf16.msra.mxu0 %v185_v45 }
 0x1a3   :  { %642 = vmatprep.subr.bf16.mxu0 %v874_v15  ;;  %v176_v47 = vpack.c.bf16 %v174_v44, %v174_v44 }
 0x1a5   :  { %633 = vmatmul.mubr.msk.bf16.vlgmr.msra.gmra.mrb[0].mxu0 %vm179_vm3, %v177_v46  ;;  %v287_v48 = vsel %vm183_vm2, %v176_v47, 0 }
 0x1a6   :  { %643 = vmatpush3.bf16.msra.mxu0 %v287_v48  ;;  %644 = vmatprep.mubr.msk.bf16.mxu0 %vm875_vm1, %v874_v15 }
 0x1a7   :  { %654 = vmatprep.subr.bf16.mxu0 %v874_v15 }
 0x1ad   :  { %645 = vmatmul.mubr.msk.bf16.vlgmr.msra.gmra.mrb[4].mxu0 %vm179_vm3, %v177_v46 }
 0x1ae   :  { %658 = vmatprep.mubr.msk.bf16.mxu0 %vm875_vm1, %v874_v15  ;;  %655 = vmatpush3.bf16.msra.mxu0 %v683_v37 }
 0x1af   :  { %656 = vmatprep.subr.bf16.mxu0 %v874_v15 }
 0x1b2   :  { %657 = vmatpush3.bf16.msra.mxu0 %v684_v38 }
 0x278   :  { %v221_v49 = vpop.f32.mrb[0].mxu0 }
 0x279   :  { %v227_v50 = vmul.f32 %v221_v49, %v221_v49  ;;  %v634_v51 = vpop.f32.mrb[1].mxu0 }
 0x27a   :  { %v224_v52 = vpop.f32.mrb[2].mxu0 }
 0x27b   :  { %v228_v53 = vmul.f32 %v227_v50, %v221_v49  ;;  %v635_v54 = vpop.f32.mrb[3].mxu0 }
 0x27d   :  { %v229_v55 = vmul.f32 0.044715, %v228_v53 }
 0x27f   :  { %v230_v56 = vadd.f32 %v229_v55, %v221_v49 }
 0x280   :  { %v323_v57 = vpop.f32.mrb[4].mxu0 }
 0x281   :  { %v231_v58 = vmul.f32 0.7978846, %v230_v56  ;;  %v329_v59 = vmul.f32 %v323_v57, %v323_v57  ;;  %v646_v60 = vpop.f32.mrb[5].mxu0 }
 0x282   :  { %v326_v61 = vpop.f32.mrb[6].mxu0 }
 0x283   :  { %691 = vtanh.f32 %v231_v58  ;;  %v330_v62 = vmul.f32 %v329_v59, %v323_v57  ;;  %v647_v63 = vpop.f32.mrb[7].mxu0  ;;  %v608_v58 = vld [vmem:[#allocation8] ss:$0 sm:$0xff] }
 0x284   :  { %v609_v63 = vld [vmem:[#allocation9] ss:$0 sm:$0xff] }
 0x285   :  { %v331_v0 = vmul.f32 0.044715, %v330_v62 }
 0x287   :  { %v332_v1 = vadd.f32 %v331_v0, %v323_v57 }
 0x289   :  { %v333_v2 = vmul.f32 0.7978846, %v332_v1 }
 0x28b   :  { %693 = vtanh.f32 %v333_v2 }
 0x28d   :  { %v692_v5 = vpop.eup %691 }
 0x28e   :  { %v233_v7 = vadd.f32 1.0, %v692_v5 }
 0x290   :  { %v234_v8 = vmul.f32 0.5, %v233_v7  ;;  %v685_v7 = vld [vmem:[%s1123_s9] sm:$0xff]  }
 0x292   :  { %v235_v10 = vmul.f32 %v234_v8, %v221_v49  ;;  %v686_v8 = vld [vmem:[%s1123_s9 + $0x8] sm:$0xff]   ;;  %s876_s9 = smov [#allocation14]  }
 0x293   :  { %s587_s4 = sshll.u32 %s876_s9, 4  ;;  %s588_s4 = int_to_ptr.vmem [resolvable:$true] %s587_s4 }
 0x294   :  { %v236_v11 = vpack.c.bf16 %v235_v10, %v235_v10  ;;  %s835_s22 = scalar_lea.vmem %s588_s4, 256  ;;  %p840_p7 = scmp.lt.s32.totalorder %s588_s4, %s588_s4 }
 0x295   :  { %v694_v12 = vpop.eup %693  ;;  %p836_p6 = scmp.ne.s32.totalorder %s588_s4, %s835_s22  ;;  %p841_p8 = scmp.lt.s32.totalorder %s835_s22, %s835_s22 }
 0x296   :  { %v335_v13 = vadd.f32 1.0, %v694_v12  ;;  %v241_v14 = vsel %vm183_vm2, %v236_v11, 0 }
 0x297   :  { %637 = vmatpush3.bf16.msra.mxu1 %v241_v14  ;;  %p842_p9 = por %p841_p8, %p840_p7 }
 0x298   :  { %v336_v17 = vmul.f32 0.5, %v335_v13  ;;  %648 = vmatprep.subr.bf16.mxu1 %v874_v15 }
 0x299   :  { %p843_p10 = pnand %p842_p9, %p836_p6 }
 0x29a   :  { %v337_v18 = vmul.f32 %v336_v17, %v323_v57  ;;  %639 = vmatmul.mubr.msk.bf16.vlgmr.msra.gmra.mrb[0].mxu1 %vm179_vm3, %v178_v16 }
 0x29b   :  { %650 = vmatprep.mubr.msk.bf16.mxu1 %vm875_vm1, %v874_v15 }
 0x29c   :  { %v338_v19 = vpack.c.bf16 %v337_v18, %v337_v18 }
 0x29e   :  { %v340_v20 = vsel %vm183_vm2, %v338_v19, 0 }
 0x29f   :  { %649 = vmatpush3.bf16.msra.mxu1 %v340_v20 }
 0x2a0   :  { %662 = vmatprep.subr.bf16.mxu1 %v874_v15 }
 0x2a2   :  { %651 = vmatmul.mubr.msk.bf16.vlgmr.msra.gmra.mrb[4].mxu1 %vm179_vm3, %v178_v16 }
 0x2a3   :  { %666 = vmatprep.mubr.msk.bf16.mxu1 %vm875_vm1, %v874_v15  ;;  %663 = vmatpush3.bf16.msra.mxu1 %v685_v7 }
 0x2a4   :  { %664 = vmatprep.subr.bf16.mxu1 %v874_v15 }
 0x2a7   :  { %665 = vmatpush3.bf16.msra.mxu1 %v686_v8 }
 0x36d   :  { %v277_v21 = vpop.f32.mrb[0].mxu1 }
 0x36e   :  { %v283_v22 = vadd.f32 %v277_v21, %v1015_v3  ;;  %v640_v23 = vpop.f32.mrb[1].mxu1 }
 0x36f   :  { %v280_v24 = vpop.f32.mrb[2].mxu1 }
 0x370   :  { %v284_v25 = vmul.f32 %v283_v22, %v1017_v4  ;;  %v641_v26 = vpop.f32.mrb[3].mxu1 }
 0x372   :  { %285 = vst.msk [vmem:[#allocation2] sm:$0xff] %vm125_vm0, %v284_v25 }
 0x375   :  { %v376_v27 = vpop.f32.mrb[4].mxu1 }
 0x376   :  { %v382_v28 = vadd.f32 %v376_v27, %v1024_v6  ;;  %v652_v29 = vpop.f32.mrb[5].mxu1 }
 0x377   :  { %v379_v30 = vpop.f32.mrb[6].mxu1 }
 0x378   :  { %v383_v31 = vmul.f32 %v382_v28, %v1027_v9  ;;  %v653_v32 = vpop.f32.mrb[7].mxu1 }
 0x379   :  { %v1065_v33 = vld [vmem:[#allocation2] sm:$0xff] }
 0x37a   :  { %385 = vst.msk [vmem:[#allocation2 + $0x8] sm:$0xff] %vm125_vm0, %v383_v31  ;;  %v390_v3 = vsel %vm125_vm0, %v1065_v33, 0.0  ;;  %v398_v4 = vmul.f32 %v1065_v33, %v1065_v33 }
 0x37b   :  { %391 = vadd.xlane.f32.xlu1 %v390_v3 }
 0x37c   :  { %v400_v34 = vsel %vm125_vm0, %v398_v4, 0.0 }
 0x37f   :  { %401 = vadd.xlane.f32.xlu1 %v400_v34 }
 0x381   :  { %v1073_v6 = vld [vmem:[#allocation2 + $0x8] sm:$0xff] }
 0x382   :  { %v393_v9 = vsel %vm125_vm0, %v1073_v6, 0.0  ;;  %v399_v35 = vmul.f32 %v1073_v6, %v1073_v6 }
 0x383   :  { %394 = vadd.xlane.f32.xlu1 %v393_v9 }
 0x384   :  { %v403_v36 = vsel %vm125_vm0, %v399_v35, 0.0 }
 0x387   :  { %404 = vadd.xlane.f32.xlu1 %v403_v36 }
 0x408   :  { %v392_v39 = vpop.xlane.xlu1 %391 }
 0x409   :  { %v396_v40 = vmul.f32 0.03125, %v392_v39 }
 0x40b   :  { %v408_v42 = vmul.f32 %v396_v40, %v396_v40  ;;  %v414_v56 = vsub.f32 %v1065_v33, %v396_v40 }
 0x40c   :  { %v402_v41 = vpop.xlane.xlu1 %401 }
 0x40d   :  { %v406_v43 = vmul.f32 0.03125, %v402_v41 }
 0x40f   :  { %v410_v44 = vsub.f32 %v406_v43, %v408_v42 }
 0x410   :  { %v395_v45 = vpop.xlane.xlu1 %394 }
 0x411   :  { %v412_v46 = vmax.f32 %v410_v44, 0.0  ;;  %v397_v47 = vmul.f32 0.03125, %v395_v45 }
 0x413   :  { %v416_v48 = vadd.f32 1e-05, %v412_v46  ;;  %v409_v50 = vmul.f32 %v397_v47, %v397_v47  ;;  %v415_v59 = vsub.f32 %v1073_v6, %v397_v47 }
 0x414   :  { %v405_v49 = vpop.xlane.xlu1 %404 }
 0x415   :  { %v407_v51 = vmul.f32 0.03125, %v405_v49  ;;  %695 = vrsqrt.f32 %v416_v48 }
 0x417   :  { %v411_v52 = vsub.f32 %v407_v51, %v409_v50 }
 0x419   :  { %v413_v53 = vmax.f32 %v411_v52, 0.0 }
 0x41b   :  { %v417_v54 = vadd.f32 1e-05, %v413_v53 }
 0x41d   :  { %697 = vrsqrt.f32 %v417_v54 }
 0x41f   :  { %v696_v55 = vpop.eup %695 }
 0x420   :  { %v420_v57 = vmul.f32 %v696_v55, %v414_v56 }
 0x422   :  { %v428_v62 = vmul.f32 %v608_v58, %v420_v57 }
 0x424   :  { %v436_v1 = vadd.f32 %v609_v63, %v428_v62 }
 0x427   :  { %v698_v60 = vpop.eup %697 }
 0x428   :  { %v421_v61 = vmul.f32 %v698_v60, %v415_v59 }
 0x42a   :  { %v429_v0 = vmul.f32 %v608_v58, %v421_v61 }
 0x42c   :  { %v437_v2 = vadd.f32 %v609_v63, %v429_v0 }
 0x42e   :  { %v438_v5 = vpack.c.bf16 %v437_v2, %v436_v1 }
 0x430   :  { %659 = vmatmul.mubr.msk.bf16.vlgmr.msra.gmra.mrb[8].mxu0 %vm125_vm0, %v438_v5 }
 0x503   :  { %v492_v10 = vpop.f32.mrb[8].mxu0 }
 0x504   :  { %v499_v11 = vmul.f32 %v492_v10, %v492_v10  ;;  %v660_v12 = vpop.f32.mrb[9].mxu0 }
 0x505   :  { %v495_v13 = vpop.f32.mrb[10].mxu0 }
 0x506   :  { %v501_v14 = vmul.f32 %v499_v11, %v492_v10  ;;  %v500_v16 = vmul.f32 %v495_v13, %v495_v13  ;;  %v661_v17 = vpop.f32.mrb[11].mxu0 }
 0x508   :  { %v503_v18 = vmul.f32 0.044715, %v501_v14  ;;  %v502_v19 = vmul.f32 %v500_v16, %v495_v13 }
 0x50a   :  { %v505_v20 = vadd.f32 %v503_v18, %v492_v10  ;;  %v504_v21 = vmul.f32 0.044715, %v502_v19 }
 0x50c   :  { %v507_v22 = vmul.f32 0.7978846, %v505_v20  ;;  %v506_v23 = vadd.f32 %v504_v21, %v495_v13 }
 0x50e   :  { %699 = vtanh.f32 %v507_v22  ;;  %v508_v15 = vmul.f32 0.7978846, %v506_v23 }
 0x510   :  { %701 = vtanh.f32 %v508_v15 }
 0x518   :  { %v700_v24 = vpop.eup %699 }
 0x519   :  { %v511_v25 = vadd.f32 1.0, %v700_v24 }
 0x51a   :  { %v702_v26 = vpop.eup %701 }
 0x51b   :  { %v513_v27 = vmul.f32 0.5, %v511_v25  ;;  %v512_v28 = vadd.f32 1.0, %v702_v26 }
 0x51d   :  { %v514_v29 = vmul.f32 0.5, %v512_v28  ;;  %v515_v30 = vmul.f32 %v513_v27, %v492_v10 }
 0x51f   :  { %v516_v31 = vmul.f32 %v514_v29, %v495_v13 }
 0x521   :  { %v517_v32 = vpack.c.bf16 %v516_v31, %v515_v30 }
 0x523   :  { %667 = vmatmul.mubr.msk.bf16.vlgmr.msra.gmra.mrb[8].mxu1 %vm125_vm0, %v517_v32 }
 0x5f6   :  { %v571_v3 = vpop.f32.mrb[8].mxu1 }
 0x5f7   :  { %v578_v4 = vadd.f32 %v571_v3, %v1065_v33  ;;  %v668_v34 = vpop.f32.mrb[9].mxu1 }
 0x5f8   :  { %v574_v9 = vpop.f32.mrb[10].mxu1 }
 0x5f9   :  { %580 = vst.msk [vmem:[#allocation14] sm:$0xff] %vm125_vm0, %v578_v4  ;;  %v579_v35 = vadd.f32 %v574_v9, %v1073_v6  ;;  %v669_v36 = vpop.f32.mrb[11].mxu1 }
 0x5fb   :  { %581 = vst.msk [vmem:[#allocation14 + $0x8] sm:$0xff] %vm125_vm0, %v579_v35 }
 0x5fc   :  { %846 = shalt.err (!%p843_p10)
}
 0x5fd   :  { %s847_s15 = scalar_lea.hbm %s1124_s10, 256 }
 0x5fe   :  { %p848_p11 = scmp.ne.s32.totalorder %s1124_s10, %s847_s15  ;;  %p851_p12 = scmp.lt.u32.totalorder %s847_s15, %s1124_s10 }
 0x600   :  { %p853_p13 = pnand %p851_p12, %p848_p11 }
 0x602   :  { %856 = shalt.err (!%p853_p13)
}
 0x603   :  { %s877_s19 = smov 128   ;;  %s878_s21 = smov 8  }
 0x604   :  { %593 = dma.vmem_to_hbm [thread:$0]  %s588_s4, 256, %s1124_s10, [#allocation5], %s877_s19, %s877_s19, %s878_s21  }
 0x605   :  { %865 = dma.done.wait [#allocation5], 256  }
 0x606   :  { %866 = vsyncadd [#allocation5], 4294967040 }
 0x607   :  { %597 = vsyncpa [#allocation4], 1 }
 0x608   :  { %598 = vsyncpa [#allocation7], 1 }
 0x609   :  { %599 = vsyncpa [#allocation10], 1 }
 0x60a   :  { %600 = vsyncpa [#allocation13], 1 }
 0x60b   :  { %601 = vsyncpa [#allocation5], 1 }

</bundles_post_ra>
